<compile_context>
chip_gen: v6e
topology: v6e:2x2x1
jax: 0.10.0
libtpu: 0.0.40
codegen_flags: <defaults>
</compile_context>

<pallas_src>
import numpy as np

import jax
import jax.numpy as jnp
from jax import lax
from jax.experimental import pallas as pl
from jax.experimental.pallas import tpu as pltpu


# ---------------------------------------------------------------------------
# Host-side (compile-time) construction of the blur matrices.
# cv2.GaussianBlur(A, (w, w), sigma)  ==  Bh @ A @ Bw^T   per channel,
# where Bh/Bw are 1-D Gaussian blur matrices with BORDER_REFLECT_101 edges.
# ---------------------------------------------------------------------------

def _gaussian_kernel_1d(ksize, sigma):
    """cv2.getGaussianKernel coefficients (float64)."""
    small_tab = {
        1: [1.0],
        3: [0.25, 0.5, 0.25],
        5: [0.0625, 0.25, 0.375, 0.25, 0.0625],
        7: [0.03125, 0.109375, 0.21875, 0.28125, 0.21875, 0.109375, 0.03125],
    }
    if sigma <= 0 and ksize in small_tab:
        return np.asarray(small_tab[ksize], dtype=np.float64)
    s = sigma if sigma > 0 else 0.3 * ((ksize - 1) * 0.5 - 1) + 0.8
    xs = np.arange(ksize, dtype=np.float64) - (ksize - 1) * 0.5
    k = np.exp(-(xs * xs) / (2.0 * s * s))
    return k / k.sum()


def _reflect101(idx, n):
    """cv2 BORDER_REFLECT_101 index mapping (gfedcb|abcdefgh|gfedcba)."""
    if n == 1:
        return 0
    while idx < 0 or idx >= n:
        idx = -idx if idx < 0 else 2 * (n - 1) - idx
    return idx


def _blur_matrix(n, g):
    """M[dst, src] such that out[dst] = sum_src M[dst, src] * in[src]."""
    k = len(g)
    r = k // 2
    m = np.zeros((n, n), dtype=np.float64)
    for dst in range(n):
        for t in range(k):
            m[dst, _reflect101(dst + t - r, n)] += g[t]
    return m


# ---------------------------------------------------------------------------
# Kernels.  Both take:
#   x_ref   : (tbc, H, W)   input tile (BC folded into one axis)
#   bh_ref  : (Hdst, Hsrc)  vertical blur matrix       (grid-invariant)
#   bwt_ref : (Wsrc, Wdst)  transposed horizontal blur (grid-invariant)
#   o_ref   : (tbc, H, W)   output tile
# ---------------------------------------------------------------------------

def _gauss_blur_kernel_flat(x_ref, bh_ref, bwt_ref, o_ref):
    """Preferred path: two flat MXU matmuls + two XLU minor-dim transposes."""
    tbc, H, W = x_ref.shape

    # Horizontal (width) blur: one flat matmul, M = tbc*H (MXU-natural).
    y = jnp.dot(x_ref[...].reshape(tbc * H, W), bwt_ref[...],
                preferred_element_type=jnp.float32).reshape(tbc, H, W)

    # Vertical (height) blur: bring H to the lane axis (XLU transpose), do one
    # flat matmul with M = tbc*W contracting Hsrc against bh's second axis
    # (the "a @ b.T" pattern), then transpose back.  No broadcast temp, no
    # per-image tiny matmuls.
    yt = jnp.transpose(y, (0, 2, 1)).reshape(tbc * W, H)        # (tbc*W, Hsrc)
    zt = jnp.dot(yt, bh_ref[...].T,
                 preferred_element_type=jnp.float32)            # (tbc*W, Hdst)
    z = jnp.transpose(zt.reshape(tbc, W, H), (0, 2, 1))         # (tbc, H, W)

    o_ref[...] = z.astype(o_ref.dtype)


def _gauss_blur_kernel_batched(x_ref, bh_ref, bwt_ref, o_ref):
    """Portability fallback (previous known-good formulation)."""
    tbc, H, W = x_ref.shape
    y = jnp.dot(x_ref[...].reshape(tbc * H, W), bwt_ref[...],
                preferred_element_type=jnp.float32).reshape(tbc, H, W)
    bh_b = jnp.broadcast_to(bh_ref[...][None], (tbc, H, H))
    z = lax.dot_general(bh_b, y,
                        dimension_numbers=(((2,), (1,)), ((0,), (0,))),
                        preferred_element_type=jnp.float32)
    o_ref[...] = z.astype(o_ref.dtype)


# ---------------------------------------------------------------------------
# Tiling heuristics + pallas_call wrapper.
# ---------------------------------------------------------------------------

def _pick_bc_tile(BC, H, W, itemsize=4):
    """VMEM-budgeted, roofline- and megacore-aware tile along the B*C axis."""
    VMEM_BUDGET = 24 * 1024 * 1024   # conservative: v7x has 64 MiB physical
    TARGET_BLOCK = 2 * 1024 * 1024   # per-step block size near the HBM roofline
    img_bytes = H * W * itemsize
    tmp_bytes = H * W * 4            # f32 in-kernel temps (y / yt / zt)
    # 2x input (double-buffered) + 2x output + ~3 live temps per BC row.
    per_row = 2 * img_bytes + 2 * img_bytes + 3 * tmp_bytes
    const_bytes = 2 * (H * H + W * W) * 4  # double-buffered blur matrices
    fit = max(1, (VMEM_BUDGET - const_bytes) // per_row)
    want = max(1, TARGET_BLOCK // img_bytes)
    tile = max(1, min(BC, fit, want))
    # v7x megacore: keep >= 2 grid steps so both TensorCores get work.
    if BC >= 2:
        tile = min(tile, max(1, BC // 2))
    # Prefer a divisor of BC so the last block computes no padded rows.
    while tile > 1 and BC % tile:
        tile -= 1
    return int(tile)


def _make_blur_call(BC, H, W, dtype, bc_tile, kernel):
    n_tiles = pl.cdiv(BC, bc_tile)
    return pl.pallas_call(
        kernel,
        out_shape=jax.ShapeDtypeStruct((BC, H, W), dtype),
        grid_spec=pltpu.PrefetchScalarGridSpec(
            num_scalar_prefetch=0,
            grid=(n_tiles,),
            in_specs=[
                pl.BlockSpec((bc_tile, H, W), lambda i: (i, 0, 0)),
                # Grid-invariant constants: DMAs elided after step 0.
                pl.BlockSpec((H, H), lambda i: (0, 0)),
                pl.BlockSpec((W, W), lambda i: (0, 0)),
            ],
            out_specs=pl.BlockSpec((bc_tile, H, W), lambda i: (i, 0, 0)),
        ),
        compiler_params=pltpu.CompilerParams(
            dimension_semantics=("parallel",),        # megacore on v7x
            vmem_limit_bytes=48 * 1024 * 1024,        # explicit, v7x-safe
        ),
    )


def gauss_blur_pallas(x, w_r, sigma, *, bc_tile=None):
    """cv2.GaussianBlur((w_r, w_r), sigma) of an NCHW float batch."""
    B, C, H, W = x.shape
    BC = B * C
    if bc_tile is None:
        bc_tile = _pick_bc_tile(BC, H, W, np.dtype(x.dtype).itemsize)

    g = _gaussian_kernel_1d(int(w_r), float(sigma))
    bh = jnp.asarray(_blur_matrix(H, g), dtype=jnp.float32)       # (Hdst, Hsrc)
    bwt = jnp.asarray(_blur_matrix(W, g).T, dtype=jnp.float32)    # (Wsrc, Wdst)

    x2 = x.reshape(BC, H, W)
    try:
        out = _make_blur_call(BC, H, W, x.dtype, bc_tile,
                              _gauss_blur_kernel_flat)(x2, bh, bwt)
    except Exception:
        # Fallback for Mosaic builds without rank-3 minor-dim transpose support.
        out = _make_blur_call(BC, H, W, x.dtype, bc_tile,
                              _gauss_blur_kernel_batched)(x2, bh, bwt)
    return out.reshape(B, C, H, W)


def new_gauss_blur_forward(noise_and_cover, w_r, sigma):
    """Mirrors New_Gauss_Blur.forward: blurs element 0 and returns the list."""
    noise_and_cover = list(noise_and_cover)
    noise_and_cover[0] = gauss_blur_pallas(noise_and_cover[0], w_r, sigma)
    return noise_and_cover


# ---------------------------------------------------------------------------
# Independent reference: direct 2-D convolution with reflect-101 padding,
# computed in float64 numpy (np.pad mode='reflect' == cv2 BORDER_REFLECT_101).
# ---------------------------------------------------------------------------

def gauss_blur_reference(x, w_r, sigma):
    g = _gaussian_kernel_1d(int(w_r), float(sigma))
    k2d = np.outer(g, g)
    r = int(w_r) // 2
    xnp = np.asarray(x, dtype=np.float64)
    xp = np.pad(xnp, ((0, 0), (0, 0), (r, r), (r, r)), mode="reflect") if r > 0 else xnp
    B, C, H, W = xnp.shape
    out = np.zeros_like(xnp)
    for dy in range(int(w_r)):
        for dx in range(int(w_r)):
            out += k2d[dy, dx] * xp[:, :, dy:dy + H, dx:dx + W]
    return out


if __name__ == "__main__":
    # Deterministic module "parameters": kernel width and sigma.
    W_R, SIGMA = 5, 1.0

    key = jax.random.PRNGKey(0)
    B, C, H, W = 2, 4, 16, 16
    x = jax.random.normal(key, (B, C, H, W), dtype=jnp.float32)

    out_list = new_gauss_blur_forward([x, x], W_R, SIGMA)
    out = jax.block_until_ready(out_list[0])

    ref = gauss_blur_reference(x, W_R, SIGMA)
    assert out.shape == (B, C, H, W) and out.dtype == jnp.float32
    np.testing.assert_allclose(np.asarray(out), ref, atol=1e-4, rtol=1e-4)
    print("KERNEL_OK")
</pallas_src>

<mosaic_0001>
module attributes {stable_mosaic.version = 11 : i64} {
  func.func @_gauss_blur_kernel_flat(%arg0: i32, %arg1: memref<4x16x16xf32, #tpu.memory_space<vmem>>, %arg2: memref<16x16xf32, #tpu.memory_space<vmem>>, %arg3: memref<16x16xf32, #tpu.memory_space<vmem>>, %arg4: memref<4x16x16xf32, #tpu.memory_space<vmem>>) attributes {dimension_semantics = [#tpu.dimension_semantics<parallel>], iteration_bounds = array<i64: 2>, scalar_prefetch = 0 : i64, scratch_operands = 0 : i64, tpu.core_type = #tpu.core_type<tc>, window_params = [{transform_indices = @transform_0, window_bounds = array<i64: 4, 16, 16>}, {pipeline_mode = #tpu.pipeline_mode<synchronous>, transform_indices = @transform_1, window_bounds = array<i64: 16, 16>}, {pipeline_mode = #tpu.pipeline_mode<synchronous>, transform_indices = @transform_2, window_bounds = array<i64: 16, 16>}, {transform_indices = @transform_3, window_bounds = array<i64: 4, 16, 16>}]} {
    %c0 = arith.constant 0 : index
    %c0_0 = arith.constant 0 : index
    %c0_1 = arith.constant 0 : index
    %0 = vector.load %arg1[%c0, %c0_0, %c0_1] : memref<4x16x16xf32, #tpu.memory_space<vmem>>, vector<4x16x16xf32>
    %1 = vector.shape_cast %0 : vector<4x16x16xf32> to vector<64x16xf32>
    %c0_2 = arith.constant 0 : index
    %c0_3 = arith.constant 0 : index
    %2 = vector.load %arg3[%c0_2, %c0_3] : memref<16x16xf32, #tpu.memory_space<vmem>>, vector<16x16xf32>
    %cst = arith.constant dense<0.000000e+00> : vector<64x16xf32>
    %3 = tpu.matmul %1, %2, %cst {dimension_numbers = #tpu.dot_dimension_numbers<[1], [0], [0], [1], [0, 0, 1, 1], [], []>} : vector<64x16xf32>, vector<16x16xf32>, vector<64x16xf32> -> vector<64x16xf32>
    %4 = vector.shape_cast %3 : vector<64x16xf32> to vector<4x16x16xf32>
    %5 = tpu.transpose %4, [0, 2, 1] : vector<4x16x16xf32> -> vector<4x16x16xf32>
    %6 = vector.shape_cast %5 : vector<4x16x16xf32> to vector<64x16xf32>
    %c0_4 = arith.constant 0 : index
    %c0_5 = arith.constant 0 : index
    %7 = vector.load %arg2[%c0_4, %c0_5] : memref<16x16xf32, #tpu.memory_space<vmem>>, vector<16x16xf32>
    %8 = tpu.transpose %7, [1, 0] : vector<16x16xf32> -> vector<16x16xf32>
    %cst_6 = arith.constant dense<0.000000e+00> : vector<64x16xf32>
    %9 = tpu.matmul %6, %8, %cst_6 {dimension_numbers = #tpu.dot_dimension_numbers<[1], [0], [0], [1], [0, 0, 1, 1], [], []>} : vector<64x16xf32>, vector<16x16xf32>, vector<64x16xf32> -> vector<64x16xf32>
    %10 = vector.shape_cast %9 : vector<64x16xf32> to vector<4x16x16xf32>
    %11 = tpu.transpose %10, [0, 2, 1] : vector<4x16x16xf32> -> vector<4x16x16xf32>
    %c0_7 = arith.constant 0 : index
    %c0_8 = arith.constant 0 : index
    %c0_9 = arith.constant 0 : index
    %12 = vector.load %arg4[%c0_7, %c0_8, %c0_9] : memref<4x16x16xf32, #tpu.memory_space<vmem>>, vector<4x16x16xf32>
    tpu.vector_store %arg4[%c0_7, %c0_8, %c0_9], %11 {strides = array<i32>} : memref<4x16x16xf32, #tpu.memory_space<vmem>>, vector<4x16x16xf32>,
    return
  }
  func.func @transform_0(%arg0: i32) -> (i32, i32, i32) {
    %c0_i32 = arith.constant 0 : i32
    %c0_i32_0 = arith.constant 0 : i32
    %c0_i32_1 = arith.constant 0 : i32
    return %arg0, %c0_i32, %c0_i32_0 : i32, i32, i32
  }
  func.func @transform_1(%arg0: i32) -> (i32, i32) {
    %c0_i32 = arith.constant 0 : i32
    %c0_i32_0 = arith.constant 0 : i32
    %c0_i32_1 = arith.constant 0 : i32
    return %c0_i32, %c0_i32_0 : i32, i32
  }
  func.func @transform_2(%arg0: i32) -> (i32, i32) {
    %c0_i32 = arith.constant 0 : i32
    %c0_i32_0 = arith.constant 0 : i32
    %c0_i32_1 = arith.constant 0 : i32
    return %c0_i32, %c0_i32_0 : i32, i32
  }
  func.func @transform_3(%arg0: i32) -> (i32, i32, i32) {
    %c0_i32 = arith.constant 0 : i32
    %c0_i32_0 = arith.constant 0 : i32
    %c0_i32_1 = arith.constant 0 : i32
    return %arg0, %c0_i32, %c0_i32_0 : i32, i32, i32
  }
}

module attributes {stable_mosaic.version = 11 : i64} {
  func.func @_gauss_blur_kernel_batched(%arg0: i32, %arg1: memref<4x16x16xf32, #tpu.memory_space<vmem>>, %arg2: memref<16x16xf32, #tpu.memory_space<vmem>>, %arg3: memref<16x16xf32, #tpu.memory_space<vmem>>, %arg4: memref<4x16x16xf32, #tpu.memory_space<vmem>>) attributes {dimension_semantics = [#tpu.dimension_semantics<parallel>], iteration_bounds = array<i64: 2>, scalar_prefetch = 0 : i64, scratch_operands = 0 : i64, tpu.core_type = #tpu.core_type<tc>, window_params = [{transform_indices = @transform_0, window_bounds = array<i64: 4, 16, 16>}, {pipeline_mode = #tpu.pipeline_mode<synchronous>, transform_indices = @transform_1, window_bounds = array<i64: 16, 16>}, {pipeline_mode = #tpu.pipeline_mode<synchronous>, transform_indices = @transform_2, window_bounds = array<i64: 16, 16>}, {transform_indices = @transform_3, window_bounds = array<i64: 4, 16, 16>}]} {
    %c0 = arith.constant 0 : index
    %c0_0 = arith.constant 0 : index
    %c0_1 = arith.constant 0 : index
    %0 = vector.load %arg1[%c0, %c0_0, %c0_1] : memref<4x16x16xf32, #tpu.memory_space<vmem>>, vector<4x16x16xf32>
    %1 = vector.shape_cast %0 : vector<4x16x16xf32> to vector<64x16xf32>
    %c0_2 = arith.constant 0 : index
    %c0_3 = arith.constant 0 : index
    %2 = vector.load %arg3[%c0_2, %c0_3] : memref<16x16xf32, #tpu.memory_space<vmem>>, vector<16x16xf32>
    %cst = arith.constant dense<0.000000e+00> : vector<64x16xf32>
    %3 = tpu.matmul %1, %2, %cst {dimension_numbers = #tpu.dot_dimension_numbers<[1], [0], [0], [1], [0, 0, 1, 1], [], []>} : vector<64x16xf32>, vector<16x16xf32>, vector<64x16xf32> -> vector<64x16xf32>
    %4 = vector.shape_cast %3 : vector<64x16xf32> to vector<4x16x16xf32>
    %c0_4 = arith.constant 0 : index
    %c0_5 = arith.constant 0 : index
    %5 = vector.load %arg2[%c0_4, %c0_5] : memref<16x16xf32, #tpu.memory_space<vmem>>, vector<16x16xf32>
    %6 = vector.shape_cast %5 : vector<16x16xf32> to vector<1x16x16xf32>
    %7 = vector.shape_cast %6 : vector<1x16x16xf32> to vector<1x16x16xf32>
    %8 = vector.broadcast %7 : vector<1x16x16xf32> to vector<4x16x16xf32>
    %cst_6 = arith.constant dense<0.000000e+00> : vector<4x16x16xf32>
    %9 = tpu.matmul %8, %4, %cst_6 {dimension_numbers = #tpu.dot_dimension_numbers<[2], [1], [1], [2], [0, 0, 0, 1, 1, 2], [0], [0]>} : vector<4x16x16xf32>, vector<4x16x16xf32>, vector<4x16x16xf32> -> vector<4x16x16xf32>
    %c0_7 = arith.constant 0 : index
    %c0_8 = arith.constant 0 : index
    %c0_9 = arith.constant 0 : index
    %10 = vector.load %arg4[%c0_7, %c0_8, %c0_9] : memref<4x16x16xf32, #tpu.memory_space<vmem>>, vector<4x16x16xf32>
    tpu.vector_store %arg4[%c0_7, %c0_8, %c0_9], %9 {strides = array<i32>} : memref<4x16x16xf32, #tpu.memory_space<vmem>>, vector<4x16x16xf32>,
    return
  }
  func.func @transform_0(%arg0: i32) -> (i32, i32, i32) {
    %c0_i32 = arith.constant 0 : i32
    %c0_i32_0 = arith.constant 0 : i32
    %c0_i32_1 = arith.constant 0 : i32
    return %arg0, %c0_i32, %c0_i32_0 : i32, i32, i32
  }
  func.func @transform_1(%arg0: i32) -> (i32, i32) {
    %c0_i32 = arith.constant 0 : i32
    %c0_i32_0 = arith.constant 0 : i32
    %c0_i32_1 = arith.constant 0 : i32
    return %c0_i32, %c0_i32_0 : i32, i32
  }
  func.func @transform_2(%arg0: i32) -> (i32, i32) {
    %c0_i32 = arith.constant 0 : i32
    %c0_i32_0 = arith.constant 0 : i32
    %c0_i32_1 = arith.constant 0 : i32
    return %c0_i32, %c0_i32_0 : i32, i32
  }
  func.func @transform_3(%arg0: i32) -> (i32, i32, i32) {
    %c0_i32 = arith.constant 0 : i32
    %c0_i32_0 = arith.constant 0 : i32
    %c0_i32_1 = arith.constant 0 : i32
    return %arg0, %c0_i32, %c0_i32_0 : i32, i32, i32
  }
}

</mosaic_0001>

<bundles_post_ra>
// kernel: tpu_custom_call.1
= control target key start
LH: loop header
LB: loop body
LE: loop exit
PB: predicated region body
PF: predicated region fallthrough
CT: control target
= control target key end

     0   :  { %8 = vsyncpa [#allocation3], 0  ;;  %s1442_s0 = inlined_call_operand.hbm [shape: f32[8,16,16], index: 0, kind: input, shape index: {}]   ;;  %s1443_s1 = inlined_call_operand.hbm [shape: f32[16,16], index: 1, kind: input, shape index: {}]   ;;  %s1444_s2 = inlined_call_operand.hbm [shape: f32[16,16], index: 2, kind: input, shape index: {}]   ;;  %s1445_s3 = inlined_call_operand.hbm [shape: f32[8,16,16], index: 3, kind: output, shape index: {}]  }
   0x1   :  { %10 = vsyncpa [#allocation3 + $0x1], 0 }
   0x2   :  { %11 = vsyncpa [#allocation6], 0 }
   0x3   :  { %12 = vsyncpa [#allocation4], 0 }
   0x4   :  { %14 = vsyncpa [#allocation4 + $0x1], 0  ;;  %s1213_s12 = smov 0   ;;  %s1215_s13 = smov 0  }
   0x5   :  { %s1217_s14 = smov 0   ;;  %s1219_s15 = smov 0  }
   0x6 LB: > { %s1234_s16 = sadd.s32 4294967295, %s1183_s15   ;;  %s869_s17 = sadd.s32 4294967294, %s1183_s15   ;;  %s1183_s15 = sphi %s1219_s15, %s1466_s15   ;;  %s1179_s14 = sphi %s1217_s14, %s1465_s14   ;;  %s1175_s13 = sphi %s1215_s13, %s1464_s13   ;;  %s1171_s12 = sphi %s1213_s12, %s1463_s12  }
   0x7   : > { %p40_p0 = scmp.ne.s32.totalorder %s1175_s13, %s1171_s12  ;;  %p1446_p1 = scmp.eq.s32.totalorder %s1234_s16, 0 }
   0x8   : > { %p106_p2 = scmp.eq.s32.totalorder %s1234_s16, 1  ;;  %p112_p3 = scmp.eq.s32.totalorder %s869_s17, 1 }
   0x9   : > { %p1243_p4 = por %p1446_p1, %p40_p0  ;;  %p870_p5 = scmp.ge.s32.totalorder %s1183_s15, 1 }
   0xa   : > { %p1248_p6 = por %p112_p3, %p40_p0  ;;  %p119_p7 = scmp.lt.s32.totalorder %s1183_s15, 3 }
   0xb   : > { %s1450_s18 = scalar_select %p1243_p4, 1, 0 }
   0xc   : > { %s1451_s19 = scalar_select %p1248_p6, 1, 0 }
   0xd   : > { %p1253_p8 = pnand %p870_p5, %p119_p7  ;;  %s1185_s21 = smov [#allocation5]  }
   0xe   : > { %s131_s22 = sshll.u32 %s1185_s21, 4  ;;  %s1186_s24 = smov [#allocation7]   ;;  %s132_s22 = int_to_ptr.vmem [resolvable:$true] %s131_s22 }
   0xf   : > { %s1452_s20 = scalar_select %p1253_p8, 1, 0 }
  0x10   : > { %p975_p9 = pneg %p1253_p8  ;;  %s144_s25 = sshll.u32 %s1186_s24, 4  ;;  %s145_s25 = int_to_ptr.vmem [resolvable:$true] %s144_s25 }
  0x11   : > { %s1046_s26 = scalar_lea.vmem %s132_s22, 256  ;;  %p1054_p5 = scmp.lt.s32.totalorder %s132_s22, %s132_s22 }
  0x12   : > { %p1262_p11 = pnand %p975_p9, %p1446_p1  ;;  %p1047_p13 = scmp.ne.s32.totalorder %s132_s22, %s1046_s26 }
  0x13   : > { %p1055_p7 = scmp.lt.s32.totalorder %s1046_s26, %s1046_s26 }
  0x14   : > { %p1037_p12 = pneg %p1262_p11 }
  0x15   : > { %p1056_p10 = por %p1055_p7, %p1054_p5 }
  0x16   : > { %p1049_p0 = pnand %p1047_p13, %p1037_p12 }
  0x18   : > { %p1050_p3 = pneg %p1049_p0 }
  0x1a   : > { %p1057_p9 = pnand %p1056_p10, %p1050_p3 }
  0x1c   : > { %1060 = shalt.err (!%p1057_p9)
}
  0x1d   : > { %s1187_s27 = smov 128   ;;  %s1188_s28 = smov 8  }
  0x1e   : > { %978 = dma.hbm_to_vmem [thread:$0]  (!%p1262_p11), %s1443_s1, 256, %s132_s22, [#allocation6], %s1187_s27, %s1187_s27, %s1188_s28  }
  0x1f   : > { %s1072_s4 = scalar_lea.vmem %s145_s25, 256  ;;  %p1080_p10 = scmp.lt.s32.totalorder %s145_s25, %s145_s25 }
  0x20   : > { %p1073_p13 = scmp.ne.s32.totalorder %s145_s25, %s1072_s4  ;;  %p1081_p3 = scmp.lt.s32.totalorder %s1072_s4, %s1072_s4 }
  0x22   : > { %p1075_p0 = pnand %p1073_p13, %p1037_p12  ;;  %p1082_p7 = por %p1081_p3, %p1080_p10 }
  0x24   : > { %p1076_p5 = pneg %p1075_p0 }
  0x26   : > { %p1083_p9 = pnand %p1082_p7, %p1076_p5 }
  0x28   : > { %1086 = shalt.err (!%p1083_p9)
}
  0x29   : > { %981 = dma.hbm_to_vmem [thread:$0]  (!%p1262_p11), %s1444_s2, 256, %s145_s25, [#allocation6], %s1187_s27, %s1187_s27, %s1188_s28  }
  0x2a   : > { %s1291_s7 = sadd.s32 1, %s1183_s15   ;;  %s27_s8 = sadd.s32 1, %s1179_s14 }
  0x2b   : > { %s24_s9 = ssub.s32 %s1183_s15, %s1291_s7  ;;  %p34_p12 = scmp.ne.s32.totalorder %s1179_s14, %s1175_s13 }
  0x2c   : > { %p25_p13 = scmp.eq.s32.totalorder %s24_s9, 0  ;;  %p35_p0 = scmp.eq.s32.totalorder %s1183_s15, 0 }
  0x2d   : > { %p1301_p5 = por %p106_p2, %p34_p12  ;;  %p992_p10 = scmp.lt.s32.totalorder %s1183_s15, 2 }
  0x2e   : > { %s1307_s11 = scalar_select %p25_p13, %s1179_s14, %s27_s8  }
  0x2f   : > { %s1454_s10 = scalar_select %p1301_p5, 1, 0 }
  0x30   : > { %p36_p3 = por %p35_p0, %p34_p12  ;;  %s158_s17 = sand.u32 1, %s1179_s14  }
  0x31   : > { %s874_s21 = sshll.u32 %s158_s17, 6  ;;  %s908_s22 = sshll.u32 %s1183_s15, 10 }
  0x32   : > { %s1314_s25 = scalar_lea.hbm %s1442_s0, %s908_s22  ;;  %s162_s26 = scalar_lea.vmem [#allocation2], %s874_s21 }
  0x33   : > { %s170_s29 = sshll.u32 %s162_s26, 4  ;;  %p1318_p2 = pnand %p992_p10, %p36_p3  ;;  %s1316_s29 = int_to_ptr.vmem [resolvable:$true] %s170_s29 }
  0x34   : > { %s1322_s4 = scalar_lea.sflag [#allocation3], %s158_s17  ;;  %s1087_s5 = scalar_lea.hbm %s1314_s25, 1024 }
  0x35   : > { %p1088_p11 = scmp.ne.s32.totalorder %s1314_s25, %s1087_s5  ;;  %p1089_p7 = pneg %p1318_p2 }
  0x36   : > { %s1092_s9 = scalar_lea.hbm %s1442_s0, 2048  ;;  %p1093_p13 = scmp.lt.s32.totalorder %s1314_s25, %s1442_s0 }
  0x37   : > { %p1090_p9 = pnand %p1089_p7, %p1088_p11  ;;  %p1094_p0 = scmp.lt.s32.totalorder %s1092_s9, %s1087_s5 }
  0x39   : > { %p1091_p12 = pneg %p1090_p9  ;;  %p1095_p10 = por %p1094_p0, %p1093_p13 }
  0x3b   : > { %p1096_p3 = pnand %p1095_p10, %p1091_p12 }
  0x3d   : > { %1099 = shalt.err (!%p1096_p3)
}
  0x3e   : > { %s1100_s17 = scalar_lea.vmem %s1316_s29, 1024  ;;  %s1189_s23 = smov [#allocation2]  }
  0x3f   : > { %p1101_p1 = scmp.ne.s32.totalorder %s1316_s29, %s1100_s17  ;;  %s1105_s24 = sshll.u32 %s1189_s23, 4  ;;  %s1106_s24 = int_to_ptr.vmem [resolvable:$false] %s1105_s24 }
  0x40   : > { %s1107_s26 = scalar_lea.vmem %s1106_s24, 2048  ;;  %p1108_p9 = scmp.lt.s32.totalorder %s1316_s29, %s1106_s24 }
  0x41   : > { %p1103_p6 = pnand %p1101_p1, %p1089_p7  ;;  %p1109_p5 = scmp.lt.s32.totalorder %s1107_s26, %s1100_s17 }
  0x43   : > { %p1104_p11 = pneg %p1103_p6  ;;  %p1110_p4 = por %p1109_p5, %p1108_p9 }
  0x45   : > { %p1111_p8 = pnand %p1110_p4, %p1104_p11 }
  0x47   : > { %1114 = shalt.err (!%p1111_p8)
}
  0x48   : > { %985 = dma.hbm_to_vmem [thread:$0]  (!%p1318_p2), %s1314_s25, 1024, %s1316_s29, %s1322_s4, %s1187_s27, %s1187_s27, %s1188_s28  }
  0x49   : > { %p1456_p1 = scmp.ne.s32.totalorder %s1452_s20, 0 }
  0x4a   : > { %s1349_s5 = sand.u32 (!%p1456_p1), 1, %s1175_s13   ;;  %p1457_p4 = scmp.ne.s32.totalorder (!%p1456_p1), %s1450_s18, 0 }
  0x4b   : > { %182 = sbr.rel (%p1456_p1) target bundleno = 763 (0x2fb), region = 32  ;;  %s879_s6 = sshll.u32 (!%p1456_p1), %s1349_s5, 6 }
  0x4c   : > { %s185_s8 = scalar_lea.sflag (!%p1456_p1), [#allocation3], %s1349_s5  ;;  %s188_s30 = scalar_lea.vmem (!%p1456_p1), [#allocation2], %s879_s6 }
  0x50   : > { %1158 = dma.done.wait (%p1457_p4), %s185_s8, 1024  }
  0x51   : > { %1160 = vsyncadd (%p1457_p4), %s185_s8, 4294966272  ;;  %p1458_p6 = scmp.eq.s32.totalorder %s1234_s16, 0 }
  0x53   : > { %1162 = dma.done.wait (%p1458_p6), [#allocation6], 512   ;;  %p1459_p8 = pmov %p1458_p6 }
  0x54   : > { %vm231_vm0 = vcmask 130048   ;;  %v230_v0 = vld [vmem:[#allocation7 + $0x8] sm:$0xff]  ;;  %v229_v1 = vld [vmem:[#allocation7] sm:$0xff]  ;;  %v221_v2 = vld [vmem:[%s188_s30] sm:$0xff]  ;;  %s218_s18 = scalar_lea.vmem [#allocation8], %s879_s6  ;;  %s910_s27 = sshll.u32 %s1234_s16, 10 }
  0x55   : > { %1164 = vsyncadd (%p1459_p8), [#allocation6], 4294966784  ;;  %931 = vmatprep.subr.mxu0 %v230_v0  ;;  %935 = vmatprep.mubr.msk.f32.mxu0 %vm231_vm0, %v221_v2  ;;  %v222_v3 = vld [vmem:[%s188_s30 + $0x8] sm:$0xff]  ;;  %v223_v4 = vld [vmem:[%s188_s30 + $0x10] sm:$0xff]  ;;  %s777_s20 = sshll.u32 %s218_s18, 4  ;;  %s1398_s29 = scalar_lea.hbm %s1445_s3, %s910_s27  ;;  %s1391_s20 = int_to_ptr.vmem [resolvable:$true] %s777_s20 }
  0x56   : > { %932 = vmatpush3.msra.mxu0 %v230_v0  ;;  %v224_v5 = vld [vmem:[%s188_s30 + $0x18] sm:$0xff]  ;;  %v225_v6 = vld [vmem:[%s188_s30 + $0x20] sm:$0xff]  ;;  %v226_v7 = vld [vmem:[%s188_s30 + $0x28] sm:$0xff]  ;;  %s763_s16 = scalar_lea.sflag [#allocation4], %s1349_s5  ;;  %s1115_s4 = scalar_lea.vmem %s1391_s20, 1024 }
  0x57   : > { %933 = vmatprep.subr.mxu0 %v229_v1  ;;  %v227_v8 = vld [vmem:[%s188_s30 + $0x30] sm:$0xff]  ;;  %v228_v9 = vld [vmem:[%s188_s30 + $0x38] sm:$0xff]  ;;  %v490_v10 = vld [vmem:[#allocation5 + $0x8] sm:$0xff]  ;;  %p1116_p5 = scmp.ne.s32.totalorder %s1391_s20, %s1115_s4  ;;  %p1460_p2 = scmp.ne.s32.totalorder %s1454_s10, 0 }
  0x58   : > { %934 = vmatpush3.msra.mxu0 %v229_v1  ;;  %947 = vmatprep.subr.msk.mxu1 %vm231_vm0, %v490_v10  ;;  %v489_v11 = vld [vmem:[#allocation5] sm:$0xff]  ;;  %s1190_s9 = smov [#allocation8]  }
  0x59   : > { %936 = vmatmul.mubr.msk.f32.vlgmr.msra.gmra.mxu0 %vm231_vm0, %v222_v3  ;;  %948 = vmatpush3.xpose.msk.msra.mxu1 %vm231_vm0, %v490_v10  ;;  %p1117_p7 = pnand %p1116_p5, %p1460_p2  ;;  %s1119_s21 = sshll.u32 %s1190_s9, 4  ;;  %s1120_s21 = int_to_ptr.vmem [resolvable:$false] %s1119_s21 }
  0x5a   : > { %938 = vmatprep.mubr.msk.f32.mxu0 %vm231_vm0, %v223_v4  ;;  %949 = vmatprep.subr.msk.mxu1 %vm231_vm0, %v489_v11  ;;  %s1121_s22 = scalar_lea.vmem %s1120_s21, 2048  ;;  %p1122_p13 = scmp.lt.s32.totalorder %s1391_s20, %s1120_s21 }
  0x5b   : > { %p1118_p12 = pneg %p1117_p7  ;;  %p1123_p0 = scmp.lt.s32.totalorder %s1121_s22, %s1115_s4 }
  0x5d   : > { %939 = vmatmul.mubr.msk.f32.gmra.mxu0 %vm231_vm0, %v224_v5  ;;  %950 = vmatpush3.xpose.msk.msra.mxu1 %vm231_vm0, %v489_v11  ;;  %p1124_p10 = por %p1123_p0, %p1122_p13 }
  0x5e   : > { %941 = vmatprep.mubr.msk.f32.mxu0 %vm231_vm0, %v225_v6 }
  0x5f   : > { %p1125_p3 = pnand %p1124_p10, %p1118_p12 }
  0x61   : > { %942 = vmatmul.mubr.msk.f32.gmra.mxu0 %vm231_vm0, %v226_v7 }
  0x62   : > { %944 = vmatprep.mubr.msk.f32.mxu0 %vm231_vm0, %v227_v8 }
  0x65   : > { %945 = vmatmul.mubr.msk.f32.gmra.mxu0 %vm231_vm0, %v228_v9 }
 0x119   : > { %v937_v12 = vpop.f32.mrf.mxu0 }
 0x11b   : > { %v322_v13 = vpop.f32.mrf.mxu0 }
 0x11c   : > { %361 = vxpose.xlu0.b32.start [1/2] (short) (narrow) %v322_v13, 16 }
 0x11d   : > { %v940_v14 = vpop.f32.mrf.mxu0 }
 0x11f   : > { %v332_v15 = vpop.f32.mrf.mxu0 }
 0x120   : > { %362 = vxpose.xlu0.b32.end [2/2] (short) (narrow) %v937_v12, 16  ;;  %393 = vxpose.xlu1.b32.start [1/2] (short) (narrow) %v332_v15, 16 }
 0x121   : > { %v943_v16 = vpop.f32.mrf.mxu0 }
 0x123   : > { %v342_v17 = vpop.f32.mrf.mxu0 }
 0x124   : > { %394 = vxpose.xlu1.b32.end [2/2] (short) (narrow) %v940_v14, 16  ;;  %425 = vxpose.xlu0.b32.start [1/2] (short) (narrow) %v342_v17, 16 }
 0x125   : > { %v946_v18 = vpop.f32.mrf.mxu0 }
 0x127   : > { %v352_v19 = vpop.f32.mrf.mxu0 }
 0x128   : > { %426 = vxpose.xlu0.b32.end [2/2] (short) (narrow) %v943_v16, 16  ;;  %457 = vxpose.xlu1.b32.start [1/2] (short) (narrow) %v352_v19, 16 }
 0x12c   : > { %458 = vxpose.xlu1.b32.end [2/2] (short) (narrow) %v946_v18, 16 }
 0x198   : > { %v377_v20 = vpop.trf.xlu0 }
 0x199   : > { %951 = vmatprep.mubr.msk.f32.mxu1 %vm231_vm0, %v377_v20 }
 0x19c   : > { %v378_v21 = vpop.trf.xlu0  ;;  %v409_v22 = vpop.trf.xlu1 }
 0x19d   : > { %952 = vmatmul.mubr.msk.f32.vlgmr.msra.gmra.mxu1 %vm231_vm0, %v378_v21 }
 0x19e   : > { %954 = vmatprep.mubr.msk.f32.mxu1 %vm231_vm0, %v409_v22 }
 0x1a0   : > { %v410_v23 = vpop.trf.xlu1  ;;  %v441_v24 = vpop.trf.xlu0 }
 0x1a1   : > { %955 = vmatmul.mubr.msk.f32.gmra.mxu1 %vm231_vm0, %v410_v23 }
 0x1a2   : > { %957 = vmatprep.mubr.msk.f32.mxu1 %vm231_vm0, %v441_v24 }
 0x1a4   : > { %v442_v25 = vpop.trf.xlu0  ;;  %v473_v26 = vpop.trf.xlu1 }
 0x1a5   : > { %958 = vmatmul.mubr.msk.f32.gmra.mxu1 %vm231_vm0, %v442_v25 }
 0x1a6   : > { %960 = vmatprep.mubr.msk.f32.mxu1 %vm231_vm0, %v473_v26 }
 0x1a8   : > { %v474_v27 = vpop.trf.xlu1 }
 0x1a9   : > { %961 = vmatmul.mubr.msk.f32.gmra.mxu1 %vm231_vm0, %v474_v27 }
 0x25d   : > { %v953_v28 = vpop.f32.mrf.mxu1 }
 0x25f   : > { %v587_v29 = vpop.f32.mrf.mxu1 }
 0x260   : > { %626 = vxpose.xlu0.b32.start [1/2] (short) (narrow) %v587_v29, 16 }
 0x261   : > { %v956_v30 = vpop.f32.mrf.mxu1 }
 0x263   : > { %v597_v31 = vpop.f32.mrf.mxu1 }
 0x264   : > { %627 = vxpose.xlu0.b32.end [2/2] (short) (narrow) %v953_v28, 16  ;;  %658 = vxpose.xlu1.b32.start [1/2] (short) (narrow) %v597_v31, 16 }
 0x265   : > { %v959_v32 = vpop.f32.mrf.mxu1 }
 0x267   : > { %v607_v33 = vpop.f32.mrf.mxu1 }
 0x268   : > { %690 = vxpose.xlu0.b32.start [1/2] (short) (narrow) %v607_v33, 16  ;;  %659 = vxpose.xlu1.b32.end [2/2] (short) (narrow) %v956_v30, 16 }
 0x269   : > { %v962_v34 = vpop.f32.mrf.mxu1 }
 0x26b   : > { %v617_v35 = vpop.f32.mrf.mxu1 }
 0x26c   : > { %691 = vxpose.xlu0.b32.end [2/2] (short) (narrow) %v959_v32, 16  ;;  %722 = vxpose.xlu1.b32.start [1/2] (short) (narrow) %v617_v35, 16 }
 0x270   : > { %723 = vxpose.xlu1.b32.end [2/2] (short) (narrow) %v962_v34, 16 }
 0x2dc   : > { %v642_v36 = vpop.trf.xlu0 }
 0x2dd   : > { %754 = vst.msk [vmem:[%s218_s18] sm:$0xff] %vm231_vm0, %v642_v36 }
 0x2e0   : > { %v674_v37 = vpop.trf.xlu1  ;;  %v643_v38 = vpop.trf.xlu0 }
 0x2e1   : > { %756 = vst.msk [vmem:[%s218_s18 + $0x10] sm:$0xff] %vm231_vm0, %v674_v37  ;;  %755 = vst.msk [vmem:[%s218_s18 + $0x8] sm:$0xff] %vm231_vm0, %v643_v38 }
 0x2e4   : > { %v675_v39 = vpop.trf.xlu1  ;;  %v706_v40 = vpop.trf.xlu0 }
 0x2e5   : > { %757 = vst.msk [vmem:[%s218_s18 + $0x18] sm:$0xff] %vm231_vm0, %v675_v39  ;;  %758 = vst.msk [vmem:[%s218_s18 + $0x20] sm:$0xff] %vm231_vm0, %v706_v40 }
 0x2e8   : > { %v738_v41 = vpop.trf.xlu1  ;;  %v707_v42 = vpop.trf.xlu0 }
 0x2e9   : > { %760 = vst.msk [vmem:[%s218_s18 + $0x30] sm:$0xff] %vm231_vm0, %v738_v41  ;;  %759 = vst.msk [vmem:[%s218_s18 + $0x28] sm:$0xff] %vm231_vm0, %v707_v42 }
 0x2ec   : > { %v739_v43 = vpop.trf.xlu1 }
 0x2ed   : > { %761 = vst.msk [vmem:[%s218_s18 + $0x38] sm:$0xff] %vm231_vm0, %v739_v43 }
 0x2ee   : > { %1128 = shalt.err (!%p1125_p3)
}
 0x2ef   : > { %s1129_s17 = scalar_lea.hbm %s1398_s29, 1024  ;;  %s1133_s26 = scalar_lea.hbm %s1445_s3, 2048 }
 0x2f0   : > { %p1130_p11 = scmp.ne.s32.totalorder %s1398_s29, %s1129_s17  ;;  %p1134_p4 = scmp.lt.s32.totalorder %s1398_s29, %s1445_s3 }
 0x2f1   : > { %p1135_p6 = scmp.lt.s32.totalorder %s1133_s26, %s1129_s17 }
 0x2f2   : > { %p1131_p9 = pnand %p1130_p11, %p1460_p2 }
 0x2f3   : > { %p1136_p8 = por %p1135_p6, %p1134_p4 }
 0x2f4   : > { %p1132_p1 = pneg %p1131_p9 }
 0x2f6   : > { %p1137_p5 = pnand %p1136_p8, %p1132_p1 }
 0x2f8   : > { %1140 = shalt.err (!%p1137_p5)
}
 0x2f9   : > { %s1191_s30 = smov 128   ;;  %s1192_s18 = smov 8  }
 0x2fa   : > { %973 = dma.vmem_to_hbm [thread:$0]  (%p1460_p2), %s1391_s20, 1024, %s1398_s29, %s763_s16, %s1191_s30, %s1191_s30, %s1192_s18  }
 0x2fb PF: > { %s792_s27 = sand.u32 1, %s1171_s12   ;;  %p1461_p7 = scmp.ne.s32.totalorder %s1451_s19, 0 }
 0x2fc   : > { %p1462_p12 = scmp.ge.s32.totalorder %s1183_s15, 2  ;;  %s793_s28 = scalar_lea.sflag [#allocation4], %s792_s27 }
 0x2fe   : > { %p987_p13 = pnand %p1462_p12, %p1461_p7 }
 0x300   : > { %p988_p0 = pneg %p987_p13 }
 0x302   : > { %1166 = dma.done.wait (%p988_p0), %s793_s28, 1024  }
 0x303   : > { %1168 = vsyncadd (%p988_p0), %s793_s28, 4294966272  ;;  %p17_p10 = scmp.ge.s32.totalorder %s1291_s7, 4   ;;  %s1463_s12 = smov %s1175_s13 }
 0x304   : > { %s1464_s13 = smov %s1179_s14  ;;  %s1465_s14 = smov %s1307_s11 }
 0x305   : > { %s1466_s15 = smov %s1291_s7  ;;  %19 = sbr.rel (!%p17_p10) target bundleno = 6 (0x6), region = 85 }
 0x30a   :  { %798 = vsyncpa [#allocation3], 1 }
 0x30b   :  { %800 = vsyncpa [#allocation3 + $0x1], 1 }
 0x30c   :  { %801 = vsyncpa [#allocation6], 1 }
 0x30d   :  { %802 = vsyncpa [#allocation4], 1 }
 0x30e   :  { %804 = vsyncpa [#allocation4 + $0x1], 1 }

// kernel: tpu_custom_call.1
= control target key start
LH: loop header
LB: loop body
LE: loop exit
PB: predicated region body
PF: predicated region fallthrough
CT: control target
= control target key end

     0   :  { %8 = vsyncpa [#allocation3], 0  ;;  %s1368_s0 = inlined_call_operand.hbm [shape: f32[8,16,16], index: 0, kind: input, shape index: {}]   ;;  %s1369_s1 = inlined_call_operand.hbm [shape: f32[16,16], index: 1, kind: input, shape index: {}]   ;;  %s1370_s2 = inlined_call_operand.hbm [shape: f32[16,16], index: 2, kind: input, shape index: {}]   ;;  %s1371_s3 = inlined_call_operand.hbm [shape: f32[8,16,16], index: 3, kind: output, shape index: {}]  }
   0x1   :  { %10 = vsyncpa [#allocation3 + $0x1], 0 }
   0x2   :  { %11 = vsyncpa [#allocation6], 0 }
   0x3   :  { %12 = vsyncpa [#allocation4], 0 }
   0x4   :  { %14 = vsyncpa [#allocation4 + $0x1], 0  ;;  %s1143_s12 = smov 0   ;;  %s1145_s13 = smov 0  }
   0x5   :  { %s1147_s14 = smov 0   ;;  %s1149_s15 = smov 0  }
   0x6 LB: > { %s1164_s16 = sadd.s32 4294967295, %s1113_s15   ;;  %s784_s17 = sadd.s32 4294967294, %s1113_s15   ;;  %s1113_s15 = sphi %s1149_s15, %s1392_s15   ;;  %s1109_s14 = sphi %s1147_s14, %s1391_s14   ;;  %s1105_s13 = sphi %s1145_s13, %s1390_s13   ;;  %s1101_s12 = sphi %s1143_s12, %s1389_s12  }
   0x7   : > { %p40_p0 = scmp.ne.s32.totalorder %s1105_s13, %s1101_s12  ;;  %p1372_p1 = scmp.eq.s32.totalorder %s1164_s16, 0 }
   0x8   : > { %p106_p2 = scmp.eq.s32.totalorder %s1164_s16, 1  ;;  %p112_p3 = scmp.eq.s32.totalorder %s784_s17, 1 }
   0x9   : > { %p1173_p4 = por %p1372_p1, %p40_p0  ;;  %p785_p5 = scmp.ge.s32.totalorder %s1113_s15, 1 }
   0xa   : > { %p1178_p6 = por %p112_p3, %p40_p0  ;;  %p119_p7 = scmp.lt.s32.totalorder %s1113_s15, 3 }
   0xb   : > { %s1376_s18 = scalar_select %p1173_p4, 1, 0 }
   0xc   : > { %s1377_s19 = scalar_select %p1178_p6, 1, 0 }
   0xd   : > { %p1183_p8 = pnand %p785_p5, %p119_p7  ;;  %s1115_s21 = smov [#allocation5]  }
   0xe   : > { %s131_s22 = sshll.u32 %s1115_s21, 4  ;;  %s1116_s24 = smov [#allocation7]   ;;  %s132_s22 = int_to_ptr.vmem [resolvable:$true] %s131_s22 }
   0xf   : > { %s1378_s20 = scalar_select %p1183_p8, 1, 0 }
  0x10   : > { %p906_p9 = pneg %p1183_p8  ;;  %s144_s25 = sshll.u32 %s1116_s24, 4  ;;  %s145_s25 = int_to_ptr.vmem [resolvable:$true] %s144_s25 }
  0x11   : > { %s976_s26 = scalar_lea.vmem %s132_s22, 256  ;;  %p984_p5 = scmp.lt.s32.totalorder %s132_s22, %s132_s22 }
  0x12   : > { %p1192_p11 = pnand %p906_p9, %p1372_p1  ;;  %p977_p13 = scmp.ne.s32.totalorder %s132_s22, %s976_s26 }
  0x13   : > { %p985_p7 = scmp.lt.s32.totalorder %s976_s26, %s976_s26 }
  0x14   : > { %p967_p12 = pneg %p1192_p11 }
  0x15   : > { %p986_p10 = por %p985_p7, %p984_p5 }
  0x16   : > { %p979_p0 = pnand %p977_p13, %p967_p12 }
  0x18   : > { %p980_p3 = pneg %p979_p0 }
  0x1a   : > { %p987_p9 = pnand %p986_p10, %p980_p3 }
  0x1c   : > { %990 = shalt.err (!%p987_p9)
}
  0x1d   : > { %s1117_s27 = smov 128   ;;  %s1118_s28 = smov 8  }
  0x1e   : > { %909 = dma.hbm_to_vmem [thread:$0]  (!%p1192_p11), %s1369_s1, 256, %s132_s22, [#allocation6], %s1117_s27, %s1117_s27, %s1118_s28  }
  0x1f   : > { %s1002_s4 = scalar_lea.vmem %s145_s25, 256  ;;  %p1010_p10 = scmp.lt.s32.totalorder %s145_s25, %s145_s25 }
  0x20   : > { %p1003_p13 = scmp.ne.s32.totalorder %s145_s25, %s1002_s4  ;;  %p1011_p3 = scmp.lt.s32.totalorder %s1002_s4, %s1002_s4 }
  0x22   : > { %p1005_p0 = pnand %p1003_p13, %p967_p12  ;;  %p1012_p7 = por %p1011_p3, %p1010_p10 }
  0x24   : > { %p1006_p5 = pneg %p1005_p0 }
  0x26   : > { %p1013_p9 = pnand %p1012_p7, %p1006_p5 }
  0x28   : > { %1016 = shalt.err (!%p1013_p9)
}
  0x29   : > { %912 = dma.hbm_to_vmem [thread:$0]  (!%p1192_p11), %s1370_s2, 256, %s145_s25, [#allocation6], %s1117_s27, %s1117_s27, %s1118_s28  }
  0x2a   : > { %s1221_s7 = sadd.s32 1, %s1113_s15   ;;  %s27_s8 = sadd.s32 1, %s1109_s14 }
  0x2b   : > { %s24_s9 = ssub.s32 %s1113_s15, %s1221_s7  ;;  %p34_p12 = scmp.ne.s32.totalorder %s1109_s14, %s1105_s13 }
  0x2c   : > { %p25_p13 = scmp.eq.s32.totalorder %s24_s9, 0  ;;  %p35_p0 = scmp.eq.s32.totalorder %s1113_s15, 0 }
  0x2d   : > { %p1231_p5 = por %p106_p2, %p34_p12  ;;  %p923_p10 = scmp.lt.s32.totalorder %s1113_s15, 2 }
  0x2e   : > { %s1237_s11 = scalar_select %p25_p13, %s1109_s14, %s27_s8  }
  0x2f   : > { %s1380_s10 = scalar_select %p1231_p5, 1, 0 }
  0x30   : > { %p36_p3 = por %p35_p0, %p34_p12  ;;  %s158_s17 = sand.u32 1, %s1109_s14  }
  0x31   : > { %s789_s21 = sshll.u32 %s158_s17, 6  ;;  %s821_s22 = sshll.u32 %s1113_s15, 10 }
  0x32   : > { %s1244_s25 = scalar_lea.hbm %s1368_s0, %s821_s22  ;;  %s162_s26 = scalar_lea.vmem [#allocation2], %s789_s21 }
  0x33   : > { %s170_s29 = sshll.u32 %s162_s26, 4  ;;  %p1248_p2 = pnand %p923_p10, %p36_p3  ;;  %s1246_s29 = int_to_ptr.vmem [resolvable:$true] %s170_s29 }
  0x34   : > { %s1252_s4 = scalar_lea.sflag [#allocation3], %s158_s17  ;;  %s1017_s5 = scalar_lea.hbm %s1244_s25, 1024 }
  0x35   : > { %p1018_p11 = scmp.ne.s32.totalorder %s1244_s25, %s1017_s5  ;;  %p1019_p7 = pneg %p1248_p2 }
  0x36   : > { %s1022_s9 = scalar_lea.hbm %s1368_s0, 2048  ;;  %p1023_p13 = scmp.lt.s32.totalorder %s1244_s25, %s1368_s0 }
  0x37   : > { %p1020_p9 = pnand %p1019_p7, %p1018_p11  ;;  %p1024_p0 = scmp.lt.s32.totalorder %s1022_s9, %s1017_s5 }
  0x39   : > { %p1021_p12 = pneg %p1020_p9  ;;  %p1025_p10 = por %p1024_p0, %p1023_p13 }
  0x3b   : > { %p1026_p3 = pnand %p1025_p10, %p1021_p12 }
  0x3d   : > { %1029 = shalt.err (!%p1026_p3)
}
  0x3e   : > { %s1030_s17 = scalar_lea.vmem %s1246_s29, 1024  ;;  %s1119_s23 = smov [#allocation2]  }
  0x3f   : > { %p1031_p1 = scmp.ne.s32.totalorder %s1246_s29, %s1030_s17  ;;  %s1035_s24 = sshll.u32 %s1119_s23, 4  ;;  %s1036_s24 = int_to_ptr.vmem [resolvable:$false] %s1035_s24 }
  0x40   : > { %s1037_s26 = scalar_lea.vmem %s1036_s24, 2048  ;;  %p1038_p9 = scmp.lt.s32.totalorder %s1246_s29, %s1036_s24 }
  0x41   : > { %p1033_p6 = pnand %p1031_p1, %p1019_p7  ;;  %p1039_p5 = scmp.lt.s32.totalorder %s1037_s26, %s1030_s17 }
  0x43   : > { %p1034_p11 = pneg %p1033_p6  ;;  %p1040_p4 = por %p1039_p5, %p1038_p9 }
  0x45   : > { %p1041_p8 = pnand %p1040_p4, %p1034_p11 }
  0x47   : > { %1044 = shalt.err (!%p1041_p8)
}
  0x48   : > { %916 = dma.hbm_to_vmem [thread:$0]  (!%p1248_p2), %s1244_s25, 1024, %s1246_s29, %s1252_s4, %s1117_s27, %s1117_s27, %s1118_s28  }
  0x49   : > { %p1382_p1 = scmp.ne.s32.totalorder %s1378_s20, 0 }
  0x4a   : > { %s1279_s5 = sand.u32 (!%p1382_p1), 1, %s1105_s13   ;;  %p1383_p4 = scmp.ne.s32.totalorder (!%p1382_p1), %s1376_s18, 0 }
  0x4b   : > { %182 = sbr.rel (%p1382_p1) target bundleno = 507 (0x1fb), region = 32  ;;  %s794_s6 = sshll.u32 (!%p1382_p1), %s1279_s5, 6 }
  0x4c   : > { %s185_s8 = scalar_lea.sflag (!%p1382_p1), [#allocation3], %s1279_s5  ;;  %s188_s30 = scalar_lea.vmem (!%p1382_p1), [#allocation2], %s794_s6 }
  0x50   : > { %1088 = dma.done.wait (%p1383_p4), %s185_s8, 1024  }
  0x51   : > { %1090 = vsyncadd (%p1383_p4), %s185_s8, 4294966272  ;;  %p1384_p6 = scmp.eq.s32.totalorder %s1164_s16, 0 }
  0x53   : > { %1092 = dma.done.wait (%p1384_p6), [#allocation6], 512   ;;  %p1385_p8 = pmov %p1384_p6 }
  0x54   : > { %vm231_vm0 = vcmask 130048   ;;  %v230_v0 = vld [vmem:[#allocation7 + $0x8] sm:$0xff]  ;;  %v229_v1 = vld [vmem:[#allocation7] sm:$0xff]  ;;  %v221_v2 = vld [vmem:[%s188_s30] sm:$0xff]  ;;  %s218_s18 = scalar_lea.vmem [#allocation8], %s794_s6  ;;  %s823_s27 = sshll.u32 %s1164_s16, 10 }
  0x55   : > { %1094 = vsyncadd (%p1385_p8), [#allocation6], 4294966784  ;;  %850 = vmatprep.subr.mxu0 %v230_v0  ;;  %854 = vmatprep.mubr.msk.f32.mxu0 %vm231_vm0, %v221_v2  ;;  %v222_v3 = vld [vmem:[%s188_s30 + $0x8] sm:$0xff]  ;;  %v223_v4 = vld [vmem:[%s188_s30 + $0x10] sm:$0xff]  ;;  %s692_s20 = sshll.u32 %s218_s18, 4  ;;  %s1323_s29 = scalar_lea.hbm %s1371_s3, %s823_s27  ;;  %s1317_s20 = int_to_ptr.vmem [resolvable:$true] %s692_s20 }
  0x56   : > { %851 = vmatpush3.msra.mxu0 %v230_v0  ;;  %v224_v5 = vld [vmem:[%s188_s30 + $0x18] sm:$0xff]  ;;  %v225_v6 = vld [vmem:[%s188_s30 + $0x20] sm:$0xff]  ;;  %v226_v7 = vld [vmem:[%s188_s30 + $0x28] sm:$0xff]  ;;  %s678_s16 = scalar_lea.sflag [#allocation4], %s1279_s5  ;;  %s1045_s4 = scalar_lea.vmem %s1317_s20, 1024 }
  0x57   : > { %852 = vmatprep.subr.mxu0 %v229_v1  ;;  %v227_v8 = vld [vmem:[%s188_s30 + $0x30] sm:$0xff]  ;;  %v228_v9 = vld [vmem:[%s188_s30 + $0x38] sm:$0xff]  ;;  %v361_v10 = vld [vmem:[#allocation5] sm:$0xff]  ;;  %p1046_p5 = scmp.ne.s32.totalorder %s1317_s20, %s1045_s4  ;;  %p1386_p2 = scmp.ne.s32.totalorder %s1380_s10, 0 }
  0x58   : > { %853 = vmatpush3.msra.mxu0 %v229_v1  ;;  %870 = vmatprep.mubr.msk.f32.mxu1 %vm231_vm0, %v361_v10  ;;  %v362_v13 = vld [vmem:[#allocation5 + $0x8] sm:$0xff]  ;;  %s1120_s9 = smov [#allocation8]  }
  0x59   : > { %855 = vmatmul.mubr.msk.f32.vlgmr.msra.gmra.mxu0 %vm231_vm0, %v222_v3  ;;  %p1047_p7 = pnand %p1046_p5, %p1386_p2  ;;  %s1049_s21 = sshll.u32 %s1120_s9, 4  ;;  %s1050_s21 = int_to_ptr.vmem [resolvable:$false] %s1049_s21 }
  0x5a   : > { %857 = vmatprep.mubr.msk.f32.mxu0 %vm231_vm0, %v223_v4  ;;  %s1051_s22 = scalar_lea.vmem %s1050_s21, 2048  ;;  %p1052_p13 = scmp.lt.s32.totalorder %s1317_s20, %s1050_s21 }
  0x5b   : > { %p1048_p12 = pneg %p1047_p7  ;;  %p1053_p0 = scmp.lt.s32.totalorder %s1051_s22, %s1045_s4 }
  0x5d   : > { %858 = vmatmul.mubr.msk.f32.gmra.mxu0 %vm231_vm0, %v224_v5  ;;  %p1054_p10 = por %p1053_p0, %p1052_p13 }
  0x5e   : > { %860 = vmatprep.mubr.msk.f32.mxu0 %vm231_vm0, %v225_v6 }
  0x5f   : > { %p1055_p3 = pnand %p1054_p10, %p1048_p12 }
  0x61   : > { %861 = vmatmul.mubr.msk.f32.gmra.mxu0 %vm231_vm0, %v226_v7 }
  0x62   : > { %863 = vmatprep.mubr.msk.f32.mxu0 %vm231_vm0, %v227_v8 }
  0x65   : > { %864 = vmatmul.mubr.msk.f32.gmra.mxu0 %vm231_vm0, %v228_v9 }
 0x119   : > { %v856_v11 = vpop.f32.mrf.mxu0 }
 0x11a   : > { %866 = vmatprep.subr.mxu1 %v856_v11 }
 0x11b   : > { %v322_v12 = vpop.f32.mrf.mxu0  ;;  %867 = vmatpush3.msra.mxu1 %v856_v11 }
 0x11c   : > { %868 = vmatprep.subr.mxu1 %v322_v12 }
 0x11d   : > { %v859_v14 = vpop.f32.mrf.mxu0  ;;  %869 = vmatpush3.msra.mxu1 %v322_v12 }
 0x11e   : > { %871 = vmatmul.mubr.msk.f32.vlgmr.msra.gmra.mxu1 %vm231_vm0, %v362_v13  ;;  %873 = vmatprep.subr.mxu1 %v859_v14 }
 0x11f   : > { %v332_v15 = vpop.f32.mrf.mxu0  ;;  %874 = vmatpush3.msra.mxu1 %v859_v14  ;;  %877 = vmatprep.mubr.msk.f32.mxu1 %vm231_vm0, %v361_v10 }
 0x120   : > { %875 = vmatprep.subr.mxu1 %v332_v15 }
 0x121   : > { %v862_v16 = vpop.f32.mrf.mxu0  ;;  %876 = vmatpush3.msra.mxu1 %v332_v15 }
 0x122   : > { %878 = vmatmul.mubr.msk.f32.vlgmr.msra.gmra.mxu1 %vm231_vm0, %v362_v13  ;;  %880 = vmatprep.subr.mxu1 %v862_v16 }
 0x123   : > { %v342_v17 = vpop.f32.mrf.mxu0  ;;  %881 = vmatpush3.msra.mxu1 %v862_v16  ;;  %884 = vmatprep.mubr.msk.f32.mxu1 %vm231_vm0, %v361_v10 }
 0x124   : > { %882 = vmatprep.subr.mxu1 %v342_v17 }
 0x125   : > { %v865_v18 = vpop.f32.mrf.mxu0  ;;  %883 = vmatpush3.msra.mxu1 %v342_v17 }
 0x126   : > { %885 = vmatmul.mubr.msk.f32.vlgmr.msra.gmra.mxu1 %vm231_vm0, %v362_v13  ;;  %887 = vmatprep.subr.mxu1 %v865_v18 }
 0x127   : > { %v352_v19 = vpop.f32.mrf.mxu0  ;;  %888 = vmatpush3.msra.mxu1 %v865_v18  ;;  %891 = vmatprep.mubr.msk.f32.mxu1 %vm231_vm0, %v361_v10 }
 0x128   : > { %889 = vmatprep.subr.mxu1 %v352_v19 }
 0x129   : > { %890 = vmatpush3.msra.mxu1 %v352_v19 }
 0x12a   : > { %892 = vmatmul.mubr.msk.f32.vlgmr.msra.gmra.mxu1 %vm231_vm0, %v362_v13 }
 0x1de   : > { %v872_v20 = vpop.f32.mrf.mxu1 }
 0x1df   : > { %670 = vst.msk [vmem:[%s218_s18 + $0x8] sm:$0xff] %vm231_vm0, %v872_v20 }
 0x1e0   : > { %v435_v21 = vpop.f32.mrf.mxu1 }
 0x1e1   : > { %669 = vst.msk [vmem:[%s218_s18] sm:$0xff] %vm231_vm0, %v435_v21 }
 0x1e2   : > { %v879_v22 = vpop.f32.mrf.mxu1 }
 0x1e3   : > { %672 = vst.msk [vmem:[%s218_s18 + $0x18] sm:$0xff] %vm231_vm0, %v879_v22 }
 0x1e4   : > { %v510_v23 = vpop.f32.mrf.mxu1 }
 0x1e5   : > { %671 = vst.msk [vmem:[%s218_s18 + $0x10] sm:$0xff] %vm231_vm0, %v510_v23 }
 0x1e6   : > { %v886_v24 = vpop.f32.mrf.mxu1 }
 0x1e7   : > { %674 = vst.msk [vmem:[%s218_s18 + $0x28] sm:$0xff] %vm231_vm0, %v886_v24 }
 0x1e8   : > { %v585_v25 = vpop.f32.mrf.mxu1 }
 0x1e9   : > { %673 = vst.msk [vmem:[%s218_s18 + $0x20] sm:$0xff] %vm231_vm0, %v585_v25 }
 0x1ea   : > { %v893_v26 = vpop.f32.mrf.mxu1 }
 0x1eb   : > { %676 = vst.msk [vmem:[%s218_s18 + $0x38] sm:$0xff] %vm231_vm0, %v893_v26 }
 0x1ec   : > { %v660_v27 = vpop.f32.mrf.mxu1 }
 0x1ed   : > { %675 = vst.msk [vmem:[%s218_s18 + $0x30] sm:$0xff] %vm231_vm0, %v660_v27 }
 0x1ee   : > { %1058 = shalt.err (!%p1055_p3)
}
 0x1ef   : > { %s1059_s17 = scalar_lea.hbm %s1323_s29, 1024  ;;  %s1063_s26 = scalar_lea.hbm %s1371_s3, 2048 }
 0x1f0   : > { %p1060_p11 = scmp.ne.s32.totalorder %s1323_s29, %s1059_s17  ;;  %p1064_p4 = scmp.lt.s32.totalorder %s1323_s29, %s1371_s3 }
 0x1f1   : > { %p1065_p6 = scmp.lt.s32.totalorder %s1063_s26, %s1059_s17 }
 0x1f2   : > { %p1061_p9 = pnand %p1060_p11, %p1386_p2 }
 0x1f3   : > { %p1066_p8 = por %p1065_p6, %p1064_p4 }
 0x1f4   : > { %p1062_p1 = pneg %p1061_p9 }
 0x1f6   : > { %p1067_p5 = pnand %p1066_p8, %p1062_p1 }
 0x1f8   : > { %1070 = shalt.err (!%p1067_p5)
}
 0x1f9   : > { %s1121_s30 = smov 128   ;;  %s1122_s18 = smov 8  }
 0x1fa   : > { %904 = dma.vmem_to_hbm [thread:$0]  (%p1386_p2), %s1317_s20, 1024, %s1323_s29, %s678_s16, %s1121_s30, %s1121_s30, %s1122_s18  }
 0x1fb PF: > { %s707_s27 = sand.u32 1, %s1101_s12   ;;  %p1387_p7 = scmp.ne.s32.totalorder %s1377_s19, 0 }
 0x1fc   : > { %p1388_p12 = scmp.ge.s32.totalorder %s1113_s15, 2  ;;  %s708_s28 = scalar_lea.sflag [#allocation4], %s707_s27 }
 0x1fe   : > { %p918_p13 = pnand %p1388_p12, %p1387_p7 }
 0x200   : > { %p919_p0 = pneg %p918_p13 }
 0x202   : > { %1096 = dma.done.wait (%p919_p0), %s708_s28, 1024  }
 0x203   : > { %1098 = vsyncadd (%p919_p0), %s708_s28, 4294966272  ;;  %p17_p10 = scmp.ge.s32.totalorder %s1221_s7, 4   ;;  %s1389_s12 = smov %s1105_s13 }
 0x204   : > { %s1390_s13 = smov %s1109_s14  ;;  %s1391_s14 = smov %s1237_s11 }
 0x205   : > { %s1392_s15 = smov %s1221_s7  ;;  %19 = sbr.rel (!%p17_p10) target bundleno = 6 (0x6), region = 85 }
 0x20a   :  { %713 = vsyncpa [#allocation3], 1 }
 0x20b   :  { %715 = vsyncpa [#allocation3 + $0x1], 1 }
 0x20c   :  { %716 = vsyncpa [#allocation6], 1 }
 0x20d   :  { %717 = vsyncpa [#allocation4], 1 }
 0x20e   :  { %719 = vsyncpa [#allocation4 + $0x1], 1 }

</bundles_post_ra>
